<compile_context>
chip_gen: v7x
topology: tpu7x:2x2x1
jax: 0.10.0
libtpu: 0.0.40
codegen_flags: <defaults>
</compile_context>

<pallas_src>
import math
from functools import partial

import jax
import jax.numpy as jnp
from jax.experimental import pallas as pl
from jax.experimental.pallas import tpu as pltpu


# ----------------------------- in-kernel helpers -----------------------------

def _layernorm(x, w, b, eps=1e-5):
    # PyTorch LayerNorm: biased variance, eps inside sqrt. f32 math.
    mu = jnp.mean(x, axis=-1, keepdims=True)
    xc = x - mu
    var = jnp.mean(xc * xc, axis=-1, keepdims=True)
    return xc * jax.lax.rsqrt(var + eps) * w + b


def _mm(a, w):
    # MXU matmul: bf16 operands, f32 accumulation.
    return jnp.dot(a.astype(jnp.bfloat16), w.astype(jnp.bfloat16),
                   preferred_element_type=jnp.float32)


# ------------------------------ stage 1: embed --------------------------------

def embed_kernel(x_ref, ew_ref, eb_ref, pe_ref, o_ref):
    """out[b,s,:] = x[b,s,:] @ embed_w + embed_b + pe[s,:]  (accumulated over vocab tiles)."""
    vi = pl.program_id(1)
    bt, S, tv = x_ref.shape
    D = o_ref.shape[-1]

    @pl.when(vi == 0)
    def _():
        # bias + positional encoding seed the accumulator (dropout = identity, eval mode)
        o_ref[...] = jnp.broadcast_to(eb_ref[...] + pe_ref[...], o_ref.shape)

    part = _mm(x_ref[...].reshape(bt * S, tv), ew_ref[...])
    o_ref[...] = o_ref[...] + part.reshape(bt, S, D)


# --------------------------- stage 2: encoder layers ---------------------------

def encoder_layers_kernel(n_heads, resident,
                          act_ref,
                          ln1w_ref, ln1b_ref, wqkv_ref, bqkv_ref, wo_ref, bo_ref,
                          ln2w_ref, ln2b_ref, w1_ref, b1_ref, w2_ref, b2_ref,
                          fw_ref, fb_ref,
                          o_ref):
    l = pl.program_id(1)
    n_layers = pl.num_programs(1)
    # resident=True  -> weight refs carry ALL layers, index with the layer id
    # resident=False -> weight refs carry one streamed layer, index 0
    wl = l if resident else 0

    bt, S, D = o_ref.shape
    N = bt * S
    hd = D // n_heads
    scale = 1.0 / math.sqrt(hd)

    @pl.when(l == 0)
    def _():
        # seed the VMEM-resident residual stream with embed(x)+PE
        o_ref[...] = act_ref[...]

    x = o_ref[...].reshape(N, D)                                     # [N, D] f32

    # ---- self-attention block (pre-norm) ----
    h = _layernorm(x, ln1w_ref[wl], ln1b_ref[wl])
    qkv = _mm(h, wqkv_ref[wl]) + bqkv_ref[wl]                        # [N, 3D], one matmul
    q = qkv[:, 0 * D:1 * D].reshape(bt, S, D)
    k = qkv[:, 1 * D:2 * D].reshape(bt, S, D)
    v = qkv[:, 2 * D:3 * D].reshape(bt, S, D)

    ctx_heads = []
    for hh in range(n_heads):                  # static unroll over heads
        lo = hh * hd
        # scale q (O(S*hd)) instead of the (S,S) score tensor; cast once per operand
        qh = (q[:, :, lo:lo + hd] * scale).astype(jnp.bfloat16)
        kh = k[:, :, lo:lo + hd].astype(jnp.bfloat16)
        vh = v[:, :, lo:lo + hd].astype(jnp.bfloat16)
        s = jnp.einsum('bqd,bkd->bqk', qh, kh, preferred_element_type=jnp.float32)
        s = s - jnp.max(s, axis=-1, keepdims=True)
        p = jnp.exp(s)
        # EUP approximate reciprocal instead of a VALU divide.
        p = p * pl.reciprocal(jnp.sum(p, axis=-1, keepdims=True), approx=True)
        ctx_heads.append(jnp.einsum('bqk,bkd->bqd', p.astype(jnp.bfloat16), vh,
                                    preferred_element_type=jnp.float32))
    # concat-then-project keeps ONE full-width [N,D]@[D,D] MXU contraction.
    # TODO(synk): head-batched einsum layout (no per-head lane slices/concat) not adopted
    # to avoid rank-4 multi-batch dot_general / sublane transposes in Mosaic lowering.
    ctx = jnp.concatenate(ctx_heads, axis=-1).reshape(N, D)
    x = x + _mm(ctx, wo_ref[wl]) + bo_ref[wl]

    # ---- feed-forward block (pre-norm, ReLU) ----
    h2 = _layernorm(x, ln2w_ref[wl], ln2b_ref[wl])
    ff = jnp.maximum(_mm(h2, w1_ref[wl]) + b1_ref[wl], 0.0)
    x = x + _mm(ff, w2_ref[wl]) + b2_ref[wl]

    # ---- write back the residual stream; final LayerNorm fused into the last step ----
    @pl.when(l == n_layers - 1)
    def _():
        o_ref[...] = _layernorm(x, fw_ref[...], fb_ref[...]).reshape(bt, S, D)

    @pl.when(l != n_layers - 1)
    def _():
        o_ref[...] = x.reshape(bt, S, D)


# ------------------------------ sizing heuristics ------------------------------

def _vmem_budget_bytes():
    """~85% of physical per-core VMEM (v7x ~54 MiB, v5e/v6e ~108 MiB); 48 MiB fallback."""
    try:
        phys = int(pltpu.get_tpu_info().vmem_capacity_bytes)
        if phys < 32 * 1024 * 1024:
            raise ValueError
        return int(min(phys * 0.85, phys - 8 * 1024 * 1024))
    except Exception:
        return 48 * 1024 * 1024


def _estimate_vmem_bytes(bt, S, D, L, resident):
    """Rough VMEM footprint (bytes) of the fused layer kernel."""
    N = bt * S
    weights = 2 * 24 * D * D * (L if resident else 1)   # bf16 wqkv+wo+w1+w2, x2 buffers
    io = 16 * N * D                                     # act-in + out f32 blocks, x2 buffers
    temps = 48 * N * D + 8 * bt * S * S                 # qkv/ffn/norm f32 temps + scores
    return weights + io + temps + (1 << 20)             # + misc headroom


def _select_block_batch(B, S, D, L, budget):
    divisors = [d for d in range(1, B + 1) if B % d == 0]
    fitting = [d for d in divisors
               if _estimate_vmem_bytes(d, S, D, L, resident=False) <= budget]
    if not fitting:
        return 1
    target_rows = 1024            # amortize per-layer weight streaming over ~1k token rows
    cands = [d for d in fitting if d * S <= target_rows] or [fitting[0]]
    bt = max(cands)
    # prefer >=2 batch tiles (both v7x TensorCores) if that still leaves >=256 rows/tile
    if B // bt < 2:
        smaller = [d for d in cands if d < bt and d * S >= 256]
        if smaller:
            bt = max(smaller)
    return bt


def _pick_vocab_tile(V):
    if V <= 4096:
        return V
    for tv in (4096, 2048, 1024, 512, 256, 128):
        if V % tv == 0:
            return tv
    return V


# ---------------------------------- wrapper ------------------------------------

def pallas_encoder(x, params, *, n_heads, block_batch=None):
    B, S, V = x.shape
    D = params['embed_b'].shape[-1]
    L = params['ln1_w'].shape[0]
    assert D % n_heads == 0
    pe = params['pe'][:S]                      # glue slice, like self.pe[:, :x.size(1)]

    budget = _vmem_budget_bytes()
    if block_batch is None:
        block_batch = _select_block_batch(B, S, D, L, budget)
    assert B % block_batch == 0, "block_batch must divide batch"
    bt = block_batch

    # ---------------- stage 1: embed + positional encoding ----------------
    tv = _pick_vocab_tile(V)
    assert V % tv == 0
    x_bf16 = x.astype(jnp.bfloat16)            # halves x DMA; matmul operands are bf16 anyway
    act = pl.pallas_call(
        embed_kernel,
        out_shape=jax.ShapeDtypeStruct((B, S, D), jnp.float32),
        grid_spec=pltpu.PrefetchScalarGridSpec(
            num_scalar_prefetch=0,
            grid=(B // bt, V // tv),
            in_specs=[
                pl.BlockSpec((bt, S, tv), lambda b, vi: (b, 0, vi)),   # x
                pl.BlockSpec((tv, D), lambda b, vi: (vi, 0)),          # embed_w (bf16)
                pl.BlockSpec((1, D), lambda b, vi: (0, 0)),            # embed_b
                pl.BlockSpec((S, D), lambda b, vi: (0, 0)),            # pe
            ],
            out_specs=pl.BlockSpec((bt, S, D), lambda b, vi: (b, 0, 0)),
        ),
        compiler_params=pltpu.CompilerParams(
            dimension_semantics=("parallel", "arbitrary"),
            vmem_limit_bytes=budget,
        ),
    )(x_bf16, params['embed_w'], params['embed_b'], pe)

    # ---------------- stage 2: fused transformer layers + final LN ----------------
    # Keep the whole weight stack resident in VMEM when it fits the budget; otherwise
    # stream one layer at a time (double-buffered) with a layer-indexed BlockSpec.
    resident = _estimate_vmem_bytes(bt, S, D, L, resident=True) <= int(0.85 * budget)

    def full(shp):
        return pl.BlockSpec(shp, lambda b, l, _n=len(shp): (0,) * _n)

    if resident:
        def wspec(shp):
            return pl.BlockSpec((L,) + shp, lambda b, l, _n=1 + len(shp): (0,) * _n)
    else:
        def wspec(shp):
            return pl.BlockSpec((1,) + shp, lambda b, l, _n=len(shp): (l,) + (0,) * _n)

    in_specs = [
        pl.BlockSpec((bt, S, D), lambda b, l: (b, 0, 0)),   # act (only read at l==0)
        wspec((1, D)),                                      # ln1_w
        wspec((1, D)),                                      # ln1_b
        wspec((D, 3 * D)),                                  # wqkv (bf16)
        wspec((1, 3 * D)),                                  # bqkv
        wspec((D, D)),                                      # wo (bf16)
        wspec((1, D)),                                      # bo
        wspec((1, D)),                                      # ln2_w
        wspec((1, D)),                                      # ln2_b
        wspec((D, 4 * D)),                                  # w1 (bf16)
        wspec((1, 4 * D)),                                  # b1
        wspec((4 * D, D)),                                  # w2 (bf16)
        wspec((1, D)),                                      # b2
        full((1, D)),                                       # final_w
        full((1, D)),                                       # final_b
    ]
    out_spec = pl.BlockSpec((bt, S, D), lambda b, l: (b, 0, 0))

    return pl.pallas_call(
        partial(encoder_layers_kernel, n_heads, resident),
        out_shape=jax.ShapeDtypeStruct((B, S, D), jnp.float32),
        grid_spec=pltpu.PrefetchScalarGridSpec(
            num_scalar_prefetch=0,
            grid=(B // bt, L),
            in_specs=in_specs,
            out_specs=out_spec,
        ),
        compiler_params=pltpu.CompilerParams(
            # batch-tile axis parallel (megacore); layer axis is a carried loop
            dimension_semantics=("parallel", "arbitrary"),
            vmem_limit_bytes=budget,
        ),
    )(act,
      params['ln1_w'], params['ln1_b'], params['wqkv'], params['bqkv'],
      params['wo'], params['bo'], params['ln2_w'], params['ln2_b'],
      params['w1'], params['b1'], params['w2'], params['b2'],
      params['final_w'], params['final_b'])


# ------------------------- deterministic parameter init ----------------------

def make_params(key, *, vocab_size, d_model, n_layers, max_seq_len):
    d_ff = 4 * d_model

    def nrm(k, shape, scale=0.05, dtype=jnp.float32):
        return (scale * jax.random.normal(k, shape)).astype(dtype)

    keys = jax.random.split(key, 2 + 8 * n_layers)
    ki = iter(keys)

    # sinusoidal positional encoding buffer (same formula as PositionalEncoding)
    position = jnp.arange(max_seq_len, dtype=jnp.float32)[:, None]
    div_term = jnp.exp(jnp.arange(0, d_model, 2, dtype=jnp.float32)
                       * (-math.log(10000.0) / d_model))
    ang = position * div_term
    pe = jnp.zeros((max_seq_len, d_model), jnp.float32)
    pe = pe.at[:, 0::2].set(jnp.sin(ang)).at[:, 1::2].set(jnp.cos(ang))

    # Matmul weights stored pre-transposed (x @ W) and in bf16 (MXU-native, halves DMA);
    # biases and LayerNorm params stay f32.
    # (int8/fp8 weight storage would halve weight HBM traffic again on v5e/v6e/v7x.)
    params = {
        'pe': pe,
        'embed_w': nrm(next(ki), (vocab_size, d_model), dtype=jnp.bfloat16),
        'embed_b': nrm(next(ki), (1, d_model)),
        'final_w': jnp.ones((1, d_model), jnp.float32),
        'final_b': jnp.zeros((1, d_model), jnp.float32),
    }

    layers = []
    for _ in range(n_layers):
        layers.append(dict(
            ln1_w=jnp.ones((1, d_model), jnp.float32),
            ln1_b=jnp.zeros((1, d_model), jnp.float32),
            wqkv=nrm(next(ki), (d_model, 3 * d_model), dtype=jnp.bfloat16),
            bqkv=nrm(next(ki), (1, 3 * d_model)),
            wo=nrm(next(ki), (d_model, d_model), dtype=jnp.bfloat16),
            bo=nrm(next(ki), (1, d_model)),
            ln2_w=jnp.ones((1, d_model), jnp.float32),
            ln2_b=jnp.zeros((1, d_model), jnp.float32),
            w1=nrm(next(ki), (d_model, d_ff), dtype=jnp.bfloat16),
            b1=nrm(next(ki), (1, d_ff)),
            w2=nrm(next(ki), (d_ff, d_model), dtype=jnp.bfloat16),
            b2=nrm(next(ki), (1, d_model)),
        ))
    # stack per-layer params on a leading layer axis so a single pallas_call can
    # stream (or keep resident) the whole stack with a layer-aware BlockSpec
    for name in layers[0]:
        params[name] = jnp.stack([lp[name] for lp in layers], axis=0)
    return params


# ----------------------------------- main ------------------------------------

if __name__ == "__main__":
    VOCAB, D_MODEL, N_LAYERS, N_HEADS = 16, 32, 2, 4
    B, S, MAX_SEQ = 4, 8, 64

    key = jax.random.PRNGKey(0)
    k_param, k_x = jax.random.split(key)
    params = make_params(k_param, vocab_size=VOCAB, d_model=D_MODEL,
                         n_layers=N_LAYERS, max_seq_len=MAX_SEQ)
    x = jax.random.normal(k_x, (B, S, VOCAB), dtype=jnp.float32)

    # TODO(synk): src_key_padding_mask is not implemented (mask=None path only);
    # dropout uses eval semantics (identity).
    out = pallas_encoder(x, params, n_heads=N_HEADS, block_batch=2)  # grid = (2, n_layers)
    out = jax.block_until_ready(out)
    assert out.shape == (B, S, D_MODEL)
    assert bool(jnp.all(jnp.isfinite(out)))
    print("KERNEL_OK")
</pallas_src>

<mosaic_0001>
module attributes {stable_mosaic.version = 11 : i64} {
  func.func @embed_kernel(%arg0: i32, %arg1: i32, %arg2: memref<2x8x16xbf16, #tpu.memory_space<vmem>>, %arg3: memref<16x32xbf16, #tpu.memory_space<vmem>>, %arg4: memref<1x32xf32, #tpu.memory_space<vmem>>, %arg5: memref<8x32xf32, #tpu.memory_space<vmem>>, %arg6: memref<2x8x32xf32, #tpu.memory_space<vmem>>) attributes {dimension_semantics = [#tpu.dimension_semantics<parallel>, #tpu.dimension_semantics<arbitrary>], iteration_bounds = array<i64: 2, 1>, scalar_prefetch = 0 : i64, scratch_operands = 0 : i64, tpu.core_type = #tpu.core_type<tc>, window_params = [{transform_indices = @transform_0, window_bounds = array<i64: 2, 8, 16>}, {transform_indices = @transform_1, window_bounds = array<i64: 16, 32>}, {pipeline_mode = #tpu.pipeline_mode<synchronous>, transform_indices = @transform_2, window_bounds = array<i64: 1, 32>}, {pipeline_mode = #tpu.pipeline_mode<synchronous>, transform_indices = @transform_3, window_bounds = array<i64: 8, 32>}, {transform_indices = @transform_4, window_bounds = array<i64: 2, 8, 32>}]} {
    %c0_i32 = arith.constant 0 : i32
    %0 = arith.cmpi eq, %arg1, %c0_i32 : i32
    %1 = arith.extui %0 : i1 to i32
    %c0_i32_0 = arith.constant 0 : i32
    %2 = arith.cmpi ne, %1, %c0_i32_0 : i32
    scf.if %2 {
      %c0_11 = arith.constant 0 : index
      %c0_12 = arith.constant 0 : index
      %11 = vector.load %arg4[%c0_11, %c0_12] : memref<1x32xf32, #tpu.memory_space<vmem>>, vector<1x32xf32>
      %c0_13 = arith.constant 0 : index
      %c0_14 = arith.constant 0 : index
      %12 = vector.load %arg5[%c0_13, %c0_14] : memref<8x32xf32, #tpu.memory_space<vmem>>, vector<8x32xf32>
      %13 = vector.broadcast %11 : vector<1x32xf32> to vector<8x32xf32>
      %14 = arith.addf %13, %12 : vector<8x32xf32>
      %15 = vector.shape_cast %14 : vector<8x32xf32> to vector<1x8x32xf32>
      %16 = vector.broadcast %15 : vector<1x8x32xf32> to vector<2x8x32xf32>
      %c0_15 = arith.constant 0 : index
      %c0_16 = arith.constant 0 : index
      %c0_17 = arith.constant 0 : index
      %17 = vector.load %arg6[%c0_15, %c0_16, %c0_17] : memref<2x8x32xf32, #tpu.memory_space<vmem>>, vector<2x8x32xf32>
      tpu.vector_store %arg6[%c0_15, %c0_16, %c0_17], %16 {strides = array<i32>} : memref<2x8x32xf32, #tpu.memory_space<vmem>>, vector<2x8x32xf32>,
    } else {
    }
    %c0 = arith.constant 0 : index
    %c0_1 = arith.constant 0 : index
    %c0_2 = arith.constant 0 : index
    %3 = vector.load %arg2[%c0, %c0_1, %c0_2] : memref<2x8x16xbf16, #tpu.memory_space<vmem>>, vector<2x8x16xbf16>
    %4 = vector.shape_cast %3 : vector<2x8x16xbf16> to vector<16x16xbf16>
    %c0_3 = arith.constant 0 : index
    %c0_4 = arith.constant 0 : index
    %5 = vector.load %arg3[%c0_3, %c0_4] : memref<16x32xbf16, #tpu.memory_space<vmem>>, vector<16x32xbf16>
    %cst = arith.constant dense<0.000000e+00> : vector<16x32xf32>
    %6 = tpu.matmul %4, %5, %cst {dimension_numbers = #tpu.dot_dimension_numbers<[1], [0], [0], [1], [0, 0, 1, 1], [], []>} : vector<16x16xbf16>, vector<16x32xbf16>, vector<16x32xf32> -> vector<16x32xf32>
    %c0_5 = arith.constant 0 : index
    %c0_6 = arith.constant 0 : index
    %c0_7 = arith.constant 0 : index
    %7 = vector.load %arg6[%c0_5, %c0_6, %c0_7] : memref<2x8x32xf32, #tpu.memory_space<vmem>>, vector<2x8x32xf32>
    %8 = vector.shape_cast %6 : vector<16x32xf32> to vector<2x8x32xf32>
    %9 = arith.addf %7, %8 : vector<2x8x32xf32>
    %c0_8 = arith.constant 0 : index
    %c0_9 = arith.constant 0 : index
    %c0_10 = arith.constant 0 : index
    %10 = vector.load %arg6[%c0_8, %c0_9, %c0_10] : memref<2x8x32xf32, #tpu.memory_space<vmem>>, vector<2x8x32xf32>
    tpu.vector_store %arg6[%c0_8, %c0_9, %c0_10], %9 {strides = array<i32>} : memref<2x8x32xf32, #tpu.memory_space<vmem>>, vector<2x8x32xf32>,
    return
  }
  func.func @transform_0(%arg0: i32, %arg1: i32) -> (i32, i32, i32) {
    %c0_i32 = arith.constant 0 : i32
    %c0_i32_0 = arith.constant 0 : i32
    return %arg0, %c0_i32, %arg1 : i32, i32, i32
  }
  func.func @transform_1(%arg0: i32, %arg1: i32) -> (i32, i32) {
    %c0_i32 = arith.constant 0 : i32
    %c0_i32_0 = arith.constant 0 : i32
    return %arg1, %c0_i32 : i32, i32
  }
  func.func @transform_2(%arg0: i32, %arg1: i32) -> (i32, i32) {
    %c0_i32 = arith.constant 0 : i32
    %c0_i32_0 = arith.constant 0 : i32
    %c0_i32_1 = arith.constant 0 : i32
    return %c0_i32, %c0_i32_0 : i32, i32
  }
  func.func @transform_3(%arg0: i32, %arg1: i32) -> (i32, i32) {
    %c0_i32 = arith.constant 0 : i32
    %c0_i32_0 = arith.constant 0 : i32
    %c0_i32_1 = arith.constant 0 : i32
    return %c0_i32, %c0_i32_0 : i32, i32
  }
  func.func @transform_4(%arg0: i32, %arg1: i32) -> (i32, i32, i32) {
    %c0_i32 = arith.constant 0 : i32
    %c0_i32_0 = arith.constant 0 : i32
    %c0_i32_1 = arith.constant 0 : i32
    return %arg0, %c0_i32, %c0_i32_0 : i32, i32, i32
  }
}

</mosaic_0001>

<bundles_post_ra>
// kernel: tpu_custom_call.1
= control target key start
LH: loop header
LB: loop body
LE: loop exit
PB: predicated region body
PF: predicated region fallthrough
CT: control target
= control target key end

     0   :  { %9 = vsyncpa [#allocation3], 0  ;;  %s978_s0 = inlined_call_operand.hbm [shape: bf16[4,8,16], index: 0, kind: input, shape index: {}]   ;;  %s979_s1 = inlined_call_operand.hbm [shape: bf16[16,32], index: 1, kind: input, shape index: {}]   ;;  %s980_s2 = inlined_call_operand.vmem [shape: f32[1,32], index: 2, kind: input, shape index: {}]   ;;  %s981_s3 = inlined_call_operand.vmem [shape: f32[8,32], index: 3, kind: input, shape index: {}]   ;;  %s982_s4 = inlined_call_operand.hbm [shape: f32[4,8,32], index: 4, kind: output, shape index: {}]  }
   0x1   :  { %11 = vsyncpa [#allocation3 + $0x1], 0 }
   0x2   :  { %12 = vsyncpa [#allocation6], 0 }
   0x3   :  { %13 = vsyncpa [#allocation4], 0 }
   0x4   :  { %15 = vsyncpa [#allocation4 + $0x1], 0  ;;  %s742_s15 = smov 0   ;;  %s744_s16 = smov 0  }
   0x5   :  { %s746_s17 = smov 0   ;;  %s748_s18 = smov 0  }
   0x6   :  { %s750_s19 = smov 0   ;;  %s752_s20 = smov 0  }
   0x7 LB: > { %s450_s21 = sadd.s32 4294967295, %s706_s20   ;;  %s451_s22 = sadd.s32 4294967294, %s706_s20   ;;  %s706_s20 = sphi %s752_s20, %s21_s20   ;;  %s702_s19 = sphi %s750_s19, %s1006_s19   ;;  %s698_s18 = sphi %s748_s18, %s1005_s18   ;;  %s694_s17 = sphi %s746_s17, %s1004_s17   ;;  %s690_s16 = sphi %s744_s16, %s1003_s16   ;;  %s686_s15 = sphi %s742_s15, %s1002_s15  }
   0x8   : > { %p55_p0 = scmp.ne.s32.totalorder %s690_s16, %s686_s15  ;;  %p776_p1 = scmp.eq.s32.totalorder %s450_s21, 0 }
   0x9   : > { %p780_p2 = scmp.eq.s32.totalorder %s450_s21, 1  ;;  %p153_p3 = scmp.eq.s32.totalorder %s451_s22, 1 }
   0xa   : > { %s987_s23 = scalar_select %p776_p1, 1, 0 }
   0xb   : > { %s988_s24 = scalar_select %p780_p2, 1, 0 }
   0xc   : > { %p786_p4 = por %p776_p1, %p55_p0  ;;  %p452_p5 = scmp.ge.s32.totalorder %s706_s20, 1 }
   0xd   : > { %p791_p6 = por %p153_p3, %p55_p0  ;;  %p160_p7 = scmp.lt.s32.totalorder %s706_s20, 3 }
   0xe   : > { %s989_s25 = scalar_select %p786_p4, 1, 0 }
   0xf   : > { %s990_s26 = scalar_select %p791_p6, 1, 0 }
  0x10   : > { %p796_p8 = pnand %p452_p5, %p160_p7  ;;  %s708_s28 = smov [#allocation5]  }
  0x11   : > { %s175_s29 = sshll.u32 %s708_s28, 4  ;;  %s33_s5 = sadd.s32 1, %s702_s19  ;;  %s176_s29 = int_to_ptr.vmem [resolvable:$true] %s175_s29 }
  0x12   : > { %s991_s27 = scalar_select %p796_p8, 1, 0 }
  0x13   : > { %p489_p9 = pneg %p796_p8  ;;  %s562_s8 = scalar_lea.hbm %s979_s1, 128 }
  0x14   : > { %p563_p12 = scmp.ne.s32.totalorder %s979_s1, %s562_s8  ;;  %p569_p5 = scmp.lt.u32.totalorder %s562_s8, %s979_s1 }
  0x15   : > { %p805_p11 = pnand %p489_p9, %p776_p1 }
  0x17   : > { %p564_p13 = pneg %p805_p11 }
  0x19   : > { %p565_p0 = pnand %p564_p13, %p563_p12 }
  0x1b   : > { %p566_p3 = pneg %p565_p0 }
  0x1d   : > { %p571_p7 = pnand %p569_p5, %p566_p3 }
  0x1f   : > { %574 = shalt.err (!%p571_p7)
}
  0x20   : > { %s575_s13 = scalar_lea.vmem %s176_s29, 128  ;;  %p583_p1 = scmp.lt.s32.totalorder %s176_s29, %s176_s29 }
  0x21   : > { %p576_p9 = scmp.ne.s32.totalorder %s176_s29, %s575_s13  ;;  %p584_p4 = scmp.lt.s32.totalorder %s575_s13, %s575_s13 }
  0x23   : > { %p578_p10 = pnand %p576_p9, %p564_p13  ;;  %p585_p8 = por %p584_p4, %p583_p1 }
  0x25   : > { %p579_p6 = pneg %p578_p10 }
  0x27   : > { %p586_p2 = pnand %p585_p8, %p579_p6 }
  0x29   : > { %589 = shalt.err (!%p586_p2)
}
  0x2a   : > { %s709_s14 = smov 64   ;;  %s710_s21 = smov 4  }
  0x2b   : > { %492 = dma.hbm_to_vmem [thread:$0]  (!%p805_p11), %s979_s1, 128, %s176_s29, [#allocation6], %s709_s14, %s709_s14, %s710_s21  }
  0x2c   : > { %p35_p1 = scmp.ge.s32.totalorder %s33_s5, 2  ;;  %s42_s6 = sadd.s32 1, %s694_s17 }
  0x2d   : > { %p49_p2 = scmp.ne.s32.totalorder %s694_s17, %s690_s16  ;;  %p50_p4 = scmp.eq.s32.totalorder %s706_s20, 0 }
  0x2e   : > { %s1008_s5 = smov (%p35_p1, %s33_s5), 0  ;;  %p994_p8 = scmp.ne.s32.totalorder %s988_s24, 0 }
  0x2f   : > { %p835_p6 = por %p50_p4, %p49_p2  ;;  %s37_s8 = ssub.s32 %s702_s19, %s1008_s5 }
  0x30   : > { %p841_p10 = por %p994_p8, %p49_p2  ;;  %p502_p12 = scmp.lt.s32.totalorder %s706_s20, 2 }
  0x31   : > { %p40_p11 = scmp.eq.s32.totalorder %s37_s8, 0  ;;  %s195_s29 = sand.u32 1, %s694_s17  }
  0x32   : > { %s455_s9 = sshll.u32 %s195_s29, 3  ;;  %s471_s11 = sshll.u32 %s702_s19, 7 }
  0x33   : > { %s850_s10 = scalar_select %p40_p11, %s694_s17, %s42_s6  }
  0x34   : > { %s856_s22 = scalar_lea.hbm %s978_s0, %s471_s11  ;;  %s199_s24 = scalar_lea.vmem [#allocation2], %s455_s9 }
  0x35   : > { %s207_s28 = sshll.u32 %s199_s24, 4  ;;  %p862_p13 = pnand %p502_p12, %p835_p6  ;;  %s858_s28 = int_to_ptr.vmem [resolvable:$true] %s207_s28 }
  0x36   : > { %s866_s6 = scalar_lea.sflag [#allocation3], %s195_s29  ;;  %s590_s12 = scalar_lea.hbm %s856_s22, 128 }
  0x37   : > { %p591_p0 = scmp.ne.s32.totalorder %s856_s22, %s590_s12  ;;  %p592_p3 = pneg %p862_p13 }
  0x38   : > { %s595_s7 = scalar_lea.hbm %s978_s0, 256  ;;  %p596_p9 = scmp.lt.u32.totalorder %s856_s22, %s978_s0 }
  0x39   : > { %p593_p5 = pnand %p592_p3, %p591_p0  ;;  %p597_p1 = scmp.lt.u32.totalorder %s595_s7, %s590_s12 }
  0x3a   : > { %p599_p4 = scmp.lt.u32.totalorder %s590_s12, %s856_s22 }
  0x3b   : > { %p594_p7 = pneg %p593_p5  ;;  %p598_p2 = por %p597_p1, %p596_p9 }
  0x3d   : > { %p600_p6 = por %p599_p4, %p598_p2 }
  0x3f   : > { %p601_p8 = pnand %p600_p6, %p594_p7 }
  0x41   : > { %604 = shalt.err (!%p601_p8)
}
  0x42   : > { %s605_s29 = scalar_lea.vmem %s858_s28, 128  ;;  %s711_s9 = smov [#allocation2]  }
  0x43   : > { %p606_p12 = scmp.ne.s32.totalorder %s858_s28, %s605_s29  ;;  %s610_s11 = sshll.u32 %s711_s9, 4  ;;  %s611_s11 = int_to_ptr.vmem [resolvable:$false] %s610_s11 }
  0x44   : > { %s612_s13 = scalar_lea.vmem %s611_s11, 256  ;;  %p613_p5 = scmp.lt.s32.totalorder %s858_s28, %s611_s11 }
  0x45   : > { %p608_p11 = pnand %p606_p12, %p592_p3  ;;  %p614_p9 = scmp.lt.s32.totalorder %s612_s13, %s605_s29 }
  0x47   : > { %p609_p0 = pneg %p608_p11  ;;  %p615_p1 = por %p614_p9, %p613_p5 }
  0x49   : > { %p616_p2 = pnand %p615_p1, %p609_p0 }
  0x4b   : > { %619 = shalt.err (!%p616_p2)
}
  0x4c   : > { %496 = dma.hbm_to_vmem [thread:$0]  (!%p862_p13), %s856_s22, 128, %s858_s28, %s866_s6, %s709_s14, %s709_s14, %s710_s21  }
  0x4d   : > { %p997_p3 = scmp.ne.s32.totalorder %s991_s27, 0 }
  0x4e   : > { %s900_s12 = sand.u32 (!%p997_p3), 1, %s690_s16   ;;  %p998_p7 = scmp.ne.s32.totalorder (!%p997_p3), %s989_s25, 0 }
  0x4f   : > { %219 = sbr.rel (%p997_p3) target bundleno = 326 (0x146), region = 36  ;;  %s459_s7 = sshll.u32 (!%p997_p3), %s900_s12, 3 }
  0x50   : > { %s222_s24 = scalar_lea.sflag (!%p997_p3), [#allocation3], %s900_s12  ;;  %s225_s29 = scalar_lea.vmem (!%p997_p3), [#allocation2], %s459_s7 }
  0x56   : > { %673 = dma.done.wait (%p998_p7), %s222_s24, 128  }
  0x57   : > { %675 = vsyncadd (%p998_p7), %s222_s24, 4294967168  ;;  %p999_p4 = scmp.ne.s32.totalorder %s987_s23, 0 }
  0x59   : > { %677 = dma.done.wait (%p999_p4), [#allocation6], 128  }
  0x5a   : > { %679 = vsyncadd (%p999_p4), [#allocation6], 4294967168  ;;  %v712_v0 = vmov 0.0   ;;  %vm713_vm0 = vmmov 0   ;;  %s461_s27 = sshll.u32 %s900_s12, 4  ;;  %v560_v1 = vld [vmem:[#allocation5] sm:$0xff]  }
  0x5b   : > { %475 = vmatprep.subr.bf16.mxu0 %v712_v0  ;;  %477 = vmatprep.mubr.msk.bf16.mxu0 %vm713_vm0, %v712_v0  ;;  %v561_v2 = vld [vmem:[%s225_s29] sm:$0xff]   ;;  %vm289_vm1 = vcmask 130048   ;;  %vm271_vm2 = vcmask 261120   ;;  %s253_s23 = scalar_lea.vmem [#allocation7], %s461_s27  ;;  %s472_s28 = sshll.u32 %s698_s18, 8 }
  0x5c   : > { %476 = vmatpush3.bf16.msra.mxu0 %v560_v1  ;;  %v462_v3 = vld [vmem:[%s980_s2] ss:$0 sm:$0xff]  ;;  %s355_s8 = sshll.u32 %s253_s23, 4  ;;  %s925_s11 = scalar_lea.hbm %s982_s4, %s472_s28  ;;  %s927_s8 = int_to_ptr.vmem [resolvable:$true] %s355_s8 }
  0x5d   : > { %v263_v4 = vld [vmem:[%s981_s3] sm:$0xff]  ;;  %s342_s18 = scalar_lea.sflag [#allocation4], %s900_s12  ;;  %s620_s13 = scalar_lea.vmem %s927_s8, 256 }
  0x5e   : > { %v270_v5 = vadd.f32 %v462_v3, %v263_v4  ;;  %p621_p13 = scmp.ne.s32.totalorder %s927_s8, %s620_s13  ;;  %s714_s7 = smov [#allocation7]  }
  0x5f   : > { %478 = vmatmul.mubr.msk.bf16.vlgmr.msra.gmra.mrb[0].mxu0 %vm289_vm1, %v561_v2  ;;  %s624_s24 = sshll.u32 %s714_s7, 4  ;;  %s625_s24 = int_to_ptr.vmem [resolvable:$false] %s624_s24 }
  0x60   : > { %272 = vst.msk [vmem:[%s253_s23] sm:$0xff] %vm271_vm2, %v270_v5  ;;  %273 = vst.msk [vmem:[%s253_s23 + $0x8] sm:$0xff] %vm271_vm2, %v270_v5  ;;  %p622_p6 = pnand %p621_p13, %p841_p10  ;;  %s626_s29 = scalar_lea.vmem %s625_s24, 512 }
  0x61   : > { %p627_p12 = scmp.lt.s32.totalorder %s927_s8, %s625_s24  ;;  %p628_p11 = scmp.lt.s32.totalorder %s626_s29, %s620_s13 }
  0x62   : > { %p623_p8 = pneg %p622_p6 }
  0x63   : > { %p629_p0 = por %p628_p11, %p627_p12 }
  0x65   : > { %p630_p5 = pnand %p629_p0, %p623_p8 }
  0x67   : > { %v334_v6 = vld [vmem:[%s253_s23] sm:$0xff]  ;;  %v335_v8 = vld [vmem:[%s253_s23 + $0x8] sm:$0xff] }
 0x132   : > { %v327_v7 = vpop.f32.mrb[0].mxu0 }
 0x133   : > { %v336_v9 = vadd.f32 %v334_v6, %v327_v7  ;;  %v479_v10 = vpop.f32.mrb[1].mxu0 }
 0x134   : > { %v330_v11 = vpop.f32.mrb[2].mxu0 }
 0x135   : > { %339 = vst.msk [vmem:[%s253_s23] sm:$0xff] %vm271_vm2, %v336_v9  ;;  %v337_v12 = vadd.f32 %v335_v8, %v330_v11  ;;  %v480_v13 = vpop.f32.mrb[3].mxu0 }
 0x137   : > { %340 = vst.msk [vmem:[%s253_s23 + $0x8] sm:$0xff] %vm271_vm2, %v337_v12 }
 0x138   : > { %633 = shalt.err (!%p630_p5)
}
 0x139   : > { %s634_s27 = scalar_lea.hbm %s925_s11, 256  ;;  %s638_s21 = scalar_lea.hbm %s982_s4, 512 }
 0x13a   : > { %p635_p9 = scmp.ne.s32.totalorder %s925_s11, %s634_s27  ;;  %p639_p3 = scmp.lt.u32.totalorder %s925_s11, %s982_s4 }
 0x13b   : > { %p640_p7 = scmp.lt.u32.totalorder %s638_s21, %s634_s27  ;;  %p642_p13 = scmp.lt.u32.totalorder %s634_s27, %s925_s11 }
 0x13c   : > { %p636_p1 = pnand %p635_p9, %p841_p10 }
 0x13d   : > { %p641_p4 = por %p640_p7, %p639_p3 }
 0x13e   : > { %p637_p2 = pneg %p636_p1 }
 0x13f   : > { %p643_p6 = por %p642_p13, %p641_p4 }
 0x141   : > { %p644_p8 = pnand %p643_p6, %p637_p2 }
 0x143   : > { %647 = shalt.err (!%p644_p8)
}
 0x144   : > { %s715_s28 = smov 128   ;;  %s716_s6 = smov 8  }
 0x145   : > { %487 = dma.vmem_to_hbm [thread:$0]  (%p841_p10), %s927_s8, 256, %s925_s11, %s342_s18, %s715_s28, %s715_s28, %s716_s6  }
 0x146 PF: > { %s370_s9 = sand.u32 1, %s686_s15   ;;  %p1000_p12 = scmp.ne.s32.totalorder %s990_s26, 0 }
 0x147   : > { %p1001_p11 = scmp.ge.s32.totalorder %s706_s20, 2  ;;  %s371_s13 = scalar_lea.sflag [#allocation4], %s370_s9 }
 0x149   : > { %p498_p0 = pnand %p1001_p11, %p1000_p12 }
 0x14b   : > { %681 = dma.done.wait (!%p498_p0), %s371_s13, 256  }
 0x14c   : > { %683 = vsyncadd (!%p498_p0), %s371_s13, 4294967040  ;;  %s21_s20 = sadd.s32 1, %s706_s20   ;;  %s1002_s15 = smov %s690_s16 }
 0x14d   : > { %p18_p5 = scmp.ge.s32.totalorder %s21_s20, 4   ;;  %s1003_s16 = smov %s694_s17 }
 0x14e   : > { %s1004_s17 = smov %s850_s10  ;;  %s1005_s18 = smov %s702_s19 }
 0x14f   : > { %s1006_s19 = smov %s1008_s5  ;;  %20 = sbr.rel (!%p18_p5) target bundleno = 7 (0x7), region = 90 }
 0x156   :  { %376 = vsyncpa [#allocation3], 1 }
 0x157   :  { %378 = vsyncpa [#allocation3 + $0x1], 1 }
 0x158   :  { %379 = vsyncpa [#allocation6], 1 }
 0x159   :  { %380 = vsyncpa [#allocation4], 1 }
 0x15a   :  { %382 = vsyncpa [#allocation4 + $0x1], 1 }

</bundles_post_ra>
